<compile_context>
chip_gen: v5e
topology: v5e:2x2
jax: 0.10.0
libtpu: 0.0.40
codegen_flags: <defaults>
</compile_context>

<pallas_src>
import jax
import jax.numpy as jnp
from jax.experimental import pallas as pl
from jax.experimental.pallas import tpu as pltpu


def _vmem_capacity_bytes():
    try:
        return int(pltpu.get_tpu_info().vmem_capacity_bytes)
    except Exception:
        return 64 * 1024 * 1024   # conservative: v7x per-TC VMEM


def channel_attention(x_nchw, fc1_w, fc2_w, *, max_lanes=None, force_streaming=False):
    """CBAM channel attention.

    x_nchw: [B, C, H, W]          (f32 or bf16)
    fc1_w:  [C//ratio, C]         (torch fc1.weight layout)
    fc2_w:  [C, C//ratio]         (torch fc2.weight layout)
    max_lanes / force_streaming: testing / tuning hooks.
    """
    b, c, h, w = x_nchw.shape
    cr = fc1_w.shape[0]
    hw = h * w
    itemsize = jnp.dtype(x_nchw.dtype).itemsize
    x3 = x_nchw.reshape(b, c, hw)

    cap = _vmem_capacity_bytes()
    vmem_limit = max(32 * 1024 * 1024, min(cap * 3 // 4, 96 * 1024 * 1024))

    wbytes = (fc1_w.size * jnp.dtype(fc1_w.dtype).itemsize
              + fc2_w.size * jnp.dtype(fc2_w.dtype).itemsize)

    # ------------------------------------------------------------------
    # Fused single-pass variant: one read + one write of x per batch row.
    # ------------------------------------------------------------------
    slab_in = c * hw * itemsize
    slab_f32 = c * hw * 4
    # double-buffered in + double-buffered out + f32 working copies
    fused_vmem_est = 2 * slab_in + 2 * slab_in + 2 * slab_f32
    use_fused = (not force_streaming) and (
        fused_vmem_est <= vmem_limit - 8 * 1024 * 1024)

    if use_fused:
        def fused_kernel(x_ref, w1_ref, w2_ref, o_ref):
            xf = x_ref[...].astype(jnp.float32)                   # (1, C, HW)
            x2 = xf.reshape(c, hw)                                # C on sublanes
            mx = jnp.max(x2, axis=-1, keepdims=True)              # (C, 1)
            mean = jnp.sum(x2, axis=-1, keepdims=True) * (1.0 / hw)
            pooled = jnp.concatenate([mx, mean], axis=1)          # (C, 2)
            w1 = w1_ref[...].astype(jnp.float32)                  # (Cr, C)
            w2 = w2_ref[...].astype(jnp.float32)                  # (C, Cr)
            hdn = jnp.maximum(
                jnp.dot(w1, pooled, preferred_element_type=jnp.float32), 0.0)  # (Cr, 2)
            hsum = hdn[:, 0:1] + hdn[:, 1:2]                      # (Cr, 1)
            logits = jnp.dot(w2, hsum, preferred_element_type=jnp.float32)     # (C, 1)
            attn = jax.nn.sigmoid(logits)                         # (C, 1)
            o_ref[...] = (x2 * attn).reshape(1, c, hw).astype(o_ref.dtype)

        cost = pl.CostEstimate(
            flops=int(3 * b * c * hw + b * (4 * c * cr + 2 * cr * c)),
            transcendentals=int(b * c),
            bytes_accessed=int(2 * x3.size * itemsize + wbytes),
        )

        out3 = pl.pallas_call(
            fused_kernel,
            out_shape=jax.ShapeDtypeStruct((b, c, hw), x_nchw.dtype),
            grid=(b,),
            in_specs=[
                pl.BlockSpec((1, c, hw), lambda ib: (ib, 0, 0)),
                pl.BlockSpec((cr, c), lambda ib: (0, 0)),
                pl.BlockSpec((c, cr), lambda ib: (0, 0)),
            ],
            out_specs=pl.BlockSpec((1, c, hw), lambda ib: (ib, 0, 0)),
            compiler_params=pltpu.CompilerParams(
                dimension_semantics=("parallel",),
                vmem_limit_bytes=vmem_limit),
            cost_estimate=cost,
        )(x3, fc1_w, fc2_w)
        return out3.reshape(b, c, h, w)

    # ------------------------------------------------------------------
    # Streaming fallback: two passes over x (pool+MLP, then scale).
    # ------------------------------------------------------------------
    block_budget = 4 * 1024 * 1024
    lane_budget = max(128, (block_budget // (c * itemsize)) // 128 * 128)
    if max_lanes is not None:
        lane_budget = max(128, (min(lane_budget, max_lanes) // 128) * 128)
    if hw <= lane_budget:
        thw = hw                      # full last dim -> always a legal block
    else:
        thw = lane_budget             # multiple of 128
    hw_tiles = pl.cdiv(hw, thw)
    rem = hw - (hw_tiles - 1) * thw   # valid lanes in the last tile
    ragged = rem != thw

    # ---- pass 1: streaming max/avg pool + shared MLP + sigmoid -> attn ----
    def pool_mlp_kernel(x_ref, w1_ref, w2_ref, attn_ref, pool_acc):
        hw_idx = pl.program_id(1)
        is_last = hw_idx == pl.num_programs(1) - 1
        x2 = x_ref[...].astype(jnp.float32).reshape(c, thw)       # C on sublanes

        @pl.when(hw_idx == 0)
        def _():
            pool_acc[:, 0:1] = jnp.full((c, 1), -jnp.inf, jnp.float32)
            pool_acc[:, 1:2] = jnp.zeros((c, 1), jnp.float32)

        def accumulate(xm, xs):
            pool_acc[:, 0:1] = jnp.maximum(
                pool_acc[:, 0:1], jnp.max(xm, axis=-1, keepdims=True))
            pool_acc[:, 1:2] = pool_acc[:, 1:2] + jnp.sum(xs, axis=-1, keepdims=True)

        if ragged:
            # Mask construction only runs on the single ragged tile; full
            # tiles accumulate unmasked.  OOB lanes of the partial block hold
            # unspecified values and must be masked for both max and sum.
            @pl.when(jnp.logical_not(is_last))
            def _():
                accumulate(x2, x2)

            @pl.when(is_last)
            def _():
                lane = jax.lax.broadcasted_iota(jnp.int32, (1, thw), 1)
                valid = lane < rem
                accumulate(jnp.where(valid, x2, -jnp.inf),
                           jnp.where(valid, x2, 0.0))
        else:
            accumulate(x2, x2)

        @pl.when(is_last)
        def _():
            pooled = jnp.concatenate(
                [pool_acc[:, 0:1], pool_acc[:, 1:2] * (1.0 / hw)], axis=1)  # (C, 2)
            w1 = w1_ref[...].astype(jnp.float32)                  # (Cr, C)
            w2 = w2_ref[...].astype(jnp.float32)                  # (C, Cr)
            hdn = jnp.maximum(
                jnp.dot(w1, pooled, preferred_element_type=jnp.float32), 0.0)
            hsum = hdn[:, 0:1] + hdn[:, 1:2]                      # (Cr, 1)
            logits = jnp.dot(w2, hsum, preferred_element_type=jnp.float32)
            attn_ref[...] = jax.nn.sigmoid(logits).reshape(1, c, 1)

    pass1_cost = pl.CostEstimate(
        flops=int(2 * b * c * hw + b * (4 * c * cr + 2 * cr * c)),
        transcendentals=int(b * c),
        bytes_accessed=int(x3.size * itemsize + wbytes + b * c * 4),
    )

    attn = pl.pallas_call(
        pool_mlp_kernel,
        out_shape=jax.ShapeDtypeStruct((b, c, 1), jnp.float32),
        grid=(b, hw_tiles),
        in_specs=[
            pl.BlockSpec((1, c, thw), lambda ib, ihw: (ib, 0, ihw)),
            # Constant index maps: tiny weight tiles stay resident.
            pl.BlockSpec((cr, c), lambda ib, ihw: (0, 0)),
            pl.BlockSpec((c, cr), lambda ib, ihw: (0, 0)),
        ],
        out_specs=pl.BlockSpec((1, c, 1), lambda ib, ihw: (ib, 0, 0)),
        scratch_shapes=[pltpu.VMEM((c, 2), jnp.float32)],
        compiler_params=pltpu.CompilerParams(
            dimension_semantics=("parallel", "arbitrary"),
            vmem_limit_bytes=vmem_limit),
        cost_estimate=pass1_cost,
    )(x3, fc1_w, fc2_w)

    # ---- pass 2: stream x again and scale by the per-(B, C) attention -----
    def scale_kernel(x_ref, attn_ref, o_ref):
        a = attn_ref[...]                                          # (1, C, 1) f32
        o_ref[...] = (x_ref[...].astype(jnp.float32) * a).astype(o_ref.dtype)

    pass2_cost = pl.CostEstimate(
        flops=int(b * c * hw),
        transcendentals=0,
        bytes_accessed=int(2 * x3.size * itemsize + b * c * 4),
    )

    out3 = pl.pallas_call(
        scale_kernel,
        out_shape=jax.ShapeDtypeStruct((b, c, hw), x_nchw.dtype),
        grid=(b, hw_tiles),
        in_specs=[
            pl.BlockSpec((1, c, thw), lambda ib, ihw: (ib, 0, ihw)),
            pl.BlockSpec((1, c, 1), lambda ib, ihw: (ib, 0, 0)),
        ],
        out_specs=pl.BlockSpec((1, c, thw), lambda ib, ihw: (ib, 0, ihw)),
        compiler_params=pltpu.CompilerParams(
            dimension_semantics=("parallel", "parallel"),
            vmem_limit_bytes=vmem_limit),
        cost_estimate=pass2_cost,
    )(x3, attn)

    return out3.reshape(b, c, h, w)


def channel_attention_ref(x, fc1_w, fc2_w):
    """Plain-JAX reference matching the PyTorch module."""
    b, c, h, w = x.shape
    xf = x.astype(jnp.float32).reshape(b, c, h * w)
    mp = jnp.max(xf, axis=-1)
    ap = jnp.mean(xf, axis=-1)
    hm = jnp.maximum(mp @ fc1_w.T, 0.0)
    ha = jnp.maximum(ap @ fc1_w.T, 0.0)
    attn = jax.nn.sigmoid(hm @ fc2_w.T + ha @ fc2_w.T)
    return (xf * attn[:, :, None]).reshape(b, c, h, w).astype(x.dtype)


if __name__ == "__main__":
    def run_case(b, c, h, w, ratio, seed, dtype=jnp.float32,
                 max_lanes=None, force_streaming=False, atol=1e-5, rtol=1e-5):
        key = jax.random.fold_in(jax.random.PRNGKey(0), seed)
        kx, k1, k2 = jax.random.split(key, 3)
        cr = c // ratio
        x = jax.random.normal(kx, (b, c, h, w), dtype=jnp.float32).astype(dtype)
        # Torch layouts: fc1.weight [Cr, C], fc2.weight [C, Cr].
        fc1_w = jax.random.normal(k1, (cr, c), dtype=jnp.float32) * 0.1
        fc2_w = jax.random.normal(k2, (c, cr), dtype=jnp.float32) * 0.1

        out = channel_attention(x, fc1_w, fc2_w, max_lanes=max_lanes,
                                force_streaming=force_streaming)
        out = jax.block_until_ready(out)
        ref = channel_attention_ref(x, fc1_w, fc2_w)
        assert out.shape == (b, c, h, w)
        err = float(jnp.max(jnp.abs(out.astype(jnp.float32) - ref.astype(jnp.float32))))
        assert jnp.allclose(out.astype(jnp.float32), ref.astype(jnp.float32),
                            atol=atol, rtol=rtol), err

    # 1) Fused single-pass path (typical small slab).
    run_case(2, 8, 16, 16, ratio=4, seed=0)
    # 2) Fused path on an odd spatial size (13x13, non-multiple of 128).
    run_case(2, 16, 13, 13, ratio=4, seed=1)
    # 3) Streaming fallback, exact multi-tile reduction (hw = 256, thw = 128).
    run_case(2, 8, 16, 16, ratio=4, seed=2, max_lanes=128, force_streaming=True)
    # 4) Streaming fallback with a ragged last tile (hw = 169, thw = 128):
    #    exercises the in-kernel -inf/0 masks and dropped OOB output stores.
    run_case(2, 16, 13, 13, ratio=4, seed=3, max_lanes=128, force_streaming=True)
    # 5) bf16 activations through the fused path (f32 math in-kernel).
    run_case(2, 8, 16, 16, ratio=4, seed=4, dtype=jnp.bfloat16, atol=2e-2, rtol=2e-2)

    print("KERNEL_OK")
</pallas_src>

<mosaic_0001>
module attributes {stable_mosaic.version = 11 : i64} {
  func.func @fused_kernel(%arg0: i32, %arg1: memref<1x8x256xf32, #tpu.memory_space<vmem>>, %arg2: memref<2x8xf32, #tpu.memory_space<vmem>>, %arg3: memref<8x2xf32, #tpu.memory_space<vmem>>, %arg4: memref<1x8x256xf32, #tpu.memory_space<vmem>>) attributes {dimension_semantics = [#tpu.dimension_semantics<parallel>], iteration_bounds = array<i64: 2>, scalar_prefetch = 0 : i64, scratch_operands = 0 : i64, tpu.core_type = #tpu.core_type<tc>, window_params = [{transform_indices = @transform_0, window_bounds = array<i64: 1, 8, 256>}, {pipeline_mode = #tpu.pipeline_mode<synchronous>, transform_indices = @transform_1, window_bounds = array<i64: 2, 8>}, {pipeline_mode = #tpu.pipeline_mode<synchronous>, transform_indices = @transform_2, window_bounds = array<i64: 8, 2>}, {transform_indices = @transform_3, window_bounds = array<i64: 1, 8, 256>}]} {
    %c0 = arith.constant 0 : index
    %c0_0 = arith.constant 0 : index
    %c0_1 = arith.constant 0 : index
    %0 = vector.load %arg1[%c0, %c0_0, %c0_1] : memref<1x8x256xf32, #tpu.memory_space<vmem>>, vector<1x8x256xf32>
    %1 = vector.shape_cast %0 : vector<1x8x256xf32> to vector<8x256xf32>
    %cst = arith.constant dense<0xFF800000> : vector<8xf32>
    %2 = vector.multi_reduction <maximumf>, %1, %cst [1] : vector<8x256xf32> to vector<8xf32>
    %3 = vector.shape_cast %2 : vector<8xf32> to vector<8x1xf32>
    %cst_2 = arith.constant dense<0.000000e+00> : vector<8xf32>
    %4 = vector.multi_reduction <add>, %1, %cst_2 [1] : vector<8x256xf32> to vector<8xf32>
    %5 = vector.shape_cast %4 : vector<8xf32> to vector<8x1xf32>
    %cst_3 = arith.constant 3.906250e-03 : f32
    %6 = vector.broadcast %cst_3 : f32 to vector<8x1xf32>
    %7 = arith.mulf %5, %6 : vector<8x1xf32>
    %8 = tpu.concatenate %3, %7 in 1 : vector<8x1xf32>, vector<8x1xf32> -> vector<8x2xf32>
    %c0_4 = arith.constant 0 : index
    %c0_5 = arith.constant 0 : index
    %9 = vector.load %arg2[%c0_4, %c0_5] : memref<2x8xf32, #tpu.memory_space<vmem>>, vector<2x8xf32>
    %c0_6 = arith.constant 0 : index
    %c0_7 = arith.constant 0 : index
    %10 = vector.load %arg3[%c0_6, %c0_7] : memref<8x2xf32, #tpu.memory_space<vmem>>, vector<8x2xf32>
    %cst_8 = arith.constant dense<0.000000e+00> : vector<2x2xf32>
    %11 = tpu.matmul %9, %8, %cst_8 {dimension_numbers = #tpu.dot_dimension_numbers<[1], [0], [0], [1], [0, 0, 1, 1], [], []>} : vector<2x8xf32>, vector<8x2xf32>, vector<2x2xf32> -> vector<2x2xf32>
    %cst_9 = arith.constant 0.000000e+00 : f32
    %12 = vector.broadcast %cst_9 : f32 to vector<2x2xf32>
    %13 = arith.maximumf %11, %12 : vector<2x2xf32>
    %14 = vector.extract_strided_slice %13 {offsets = [0, 0], sizes = [2, 1], strides = [1, 1]} : vector<2x2xf32> to vector<2x1xf32>
    %15 = vector.extract_strided_slice %13 {offsets = [0, 1], sizes = [2, 1], strides = [1, 1]} : vector<2x2xf32> to vector<2x1xf32>
    %16 = arith.addf %14, %15 : vector<2x1xf32>
    %cst_10 = arith.constant dense<0.000000e+00> : vector<8x1xf32>
    %17 = tpu.matmul %10, %16, %cst_10 {dimension_numbers = #tpu.dot_dimension_numbers<[1], [0], [0], [1], [0, 0, 1, 1], [], []>} : vector<8x2xf32>, vector<2x1xf32>, vector<8x1xf32> -> vector<8x1xf32>
    %18 = arith.negf %17 : vector<8x1xf32>
    %19 = math.exp %18 : vector<8x1xf32>
    %cst_11 = arith.constant 1.000000e+00 : f32
    %20 = vector.broadcast %cst_11 : f32 to vector<8x1xf32>
    %21 = arith.addf %20, %19 : vector<8x1xf32>
    %22 = arith.divf %20, %21 : vector<8x1xf32>
    %23 = vector.broadcast %22 : vector<8x1xf32> to vector<8x256xf32>
    %24 = arith.mulf %1, %23 : vector<8x256xf32>
    %25 = vector.shape_cast %24 : vector<8x256xf32> to vector<1x8x256xf32>
    %c0_12 = arith.constant 0 : index
    %c0_13 = arith.constant 0 : index
    %c0_14 = arith.constant 0 : index
    %26 = vector.load %arg4[%c0_12, %c0_13, %c0_14] : memref<1x8x256xf32, #tpu.memory_space<vmem>>, vector<1x8x256xf32>
    tpu.vector_store %arg4[%c0_12, %c0_13, %c0_14], %25 {strides = array<i32>} : memref<1x8x256xf32, #tpu.memory_space<vmem>>, vector<1x8x256xf32>,
    return
  }
  func.func @transform_0(%arg0: i32) -> (i32, i32, i32) {
    %c0_i32 = arith.constant 0 : i32
    %c0_i32_0 = arith.constant 0 : i32
    %c0_i32_1 = arith.constant 0 : i32
    return %arg0, %c0_i32, %c0_i32_0 : i32, i32, i32
  }
  func.func @transform_1(%arg0: i32) -> (i32, i32) {
    %c0_i32 = arith.constant 0 : i32
    %c0_i32_0 = arith.constant 0 : i32
    %c0_i32_1 = arith.constant 0 : i32
    return %c0_i32, %c0_i32_0 : i32, i32
  }
  func.func @transform_2(%arg0: i32) -> (i32, i32) {
    %c0_i32 = arith.constant 0 : i32
    %c0_i32_0 = arith.constant 0 : i32
    %c0_i32_1 = arith.constant 0 : i32
    return %c0_i32, %c0_i32_0 : i32, i32
  }
  func.func @transform_3(%arg0: i32) -> (i32, i32, i32) {
    %c0_i32 = arith.constant 0 : i32
    %c0_i32_0 = arith.constant 0 : i32
    %c0_i32_1 = arith.constant 0 : i32
    return %arg0, %c0_i32, %c0_i32_0 : i32, i32, i32
  }
}

</mosaic_0001>

<bundles_post_ra>
// kernel: tpu_custom_call.1
= control target key start
LH: loop header
LB: loop body
LE: loop exit
PB: predicated region body
PF: predicated region fallthrough
CT: control target
= control target key end

     0   :  { %8 = vsyncpa [#allocation3], 0  ;;  %s706_s0 = inlined_call_operand.hbm [shape: f32[2,8,256], index: 0, kind: input, shape index: {}]   ;;  %s707_s1 = inlined_call_operand.vmem [shape: f32[2,8], index: 1, kind: input, shape index: {}]   ;;  %s708_s2 = inlined_call_operand.vmem [shape: f32[8,2], index: 2, kind: input, shape index: {}]   ;;  %s709_s3 = inlined_call_operand.hbm [shape: f32[2,8,256], index: 3, kind: output, shape index: {}]  }
   0x1   :  { %10 = vsyncpa [#allocation3 + $0x1], 0 }
   0x2   :  { %11 = vsyncpa [#allocation4], 0 }
   0x3   :  { %13 = vsyncpa [#allocation4 + $0x1], 0  ;;  %s569_s12 = smov 0   ;;  %s571_s13 = smov 0  }
   0x4   :  { %s573_s14 = smov 0   ;;  %s575_s15 = smov 0  }
   0x5 LB: > { %s590_s16 = sadd.s32 4294967295, %s545_s15   ;;  %s375_s17 = sadd.s32 4294967294, %s545_s15   ;;  %s545_s15 = sphi %s575_s15, %s719_s15   ;;  %s541_s14 = sphi %s573_s14, %s718_s14   ;;  %s537_s13 = sphi %s571_s13, %s717_s13   ;;  %s533_s12 = sphi %s569_s12, %s716_s12  }
   0x6   : > { %s594_s18 = sadd.s32 1, %s545_s15   ;;  %s26_s19 = sadd.s32 1, %s541_s14 }
   0x7   : > { %s23_s20 = ssub.s32 %s545_s15, %s594_s18  ;;  %p33_p0 = scmp.ne.s32.totalorder %s541_s14, %s537_s13 }
   0x8   : > { %p24_p1 = scmp.eq.s32.totalorder %s23_s20, 0  ;;  %p34_p2 = scmp.eq.s32.totalorder %s545_s15, 0 }
   0x9   : > { %p39_p3 = scmp.ne.s32.totalorder %s537_s13, %s533_s12  ;;  %p40_p4 = scmp.eq.s32.totalorder %s590_s16, 0 }
   0xa   : > { %s606_s21 = scalar_select %p24_p1, %s541_s14, %s26_s19  }
   0xb   : > { %p608_p5 = por %p34_p2, %p33_p0  ;;  %p612_p6 = por %p40_p4, %p39_p3 }
   0xc   : > { %p105_p7 = scmp.eq.s32.totalorder %s590_s16, 1  ;;  %p111_p8 = scmp.eq.s32.totalorder %s375_s17, 1 }
   0xd   : > { %p407_p10 = scmp.lt.s32.totalorder %s545_s15, 2  ;;  %s137_s26 = sand.u32 1, %s541_s14  }
   0xe   : > { %p619_p11 = por %p105_p7, %p33_p0  ;;  %p623_p12 = por %p111_p8, %p39_p3 }
   0xf   : > { %s393_s27 = sshll.u32 %s545_s15, 4  ;;  %s378_s28 = sshll.u32 %s137_s26, 4 }
  0x10   : > { %s146_s4 = scalar_lea.hbm %s706_s0, %s393_s27  ;;  %s141_s6 = scalar_lea.vmem [#allocation2], %s378_s28 }
  0x11   : > { %s148_s5 = sshll.u32 %s146_s4, 4  ;;  %s150_s7 = sshll.u32 %s141_s6, 4  ;;  %s149_s5 = int_to_ptr.hbm [resolvable:$true] %s148_s5  ;;  %s151_s7 = int_to_ptr.vmem [resolvable:$true] %s150_s7 }
  0x12   : > { %p634_p13 = pnand %p407_p10, %p608_p5  ;;  %p381_p0 = scmp.ge.s32.totalorder %s545_s15, 1 }
  0x13   : > { %p155_p1 = scmp.lt.s32.totalorder %s545_s15, 3  ;;  %s138_s9 = scalar_lea.sflag [#allocation3], %s137_s26 }
  0x14   : > { %s449_s10 = sshra.s32 %s149_s5, 4  ;;  %p453_p3 = pneg %p634_p13  ;;  %s450_s10 = int_to_ptr.hbm [resolvable:$true] %s449_s10 }
  0x15   : > { %s451_s11 = scalar_lea.hbm %s450_s10, 16  ;;  %s456_s20 = scalar_lea.hbm %s706_s0, 32 }
  0x16   : > { %p452_p2 = scmp.ne.s32.totalorder %s450_s10, %s451_s11  ;;  %p457_p5 = scmp.lt.s32.totalorder %s450_s10, %s706_s0 }
  0x17   : > { %p458_p8 = scmp.lt.s32.totalorder %s456_s20, %s451_s11 }
  0x18   : > { %p454_p4 = pnand %p453_p3, %p452_p2 }
  0x19   : > { %p459_p10 = por %p458_p8, %p457_p5 }
  0x1a   : > { %p455_p7 = pneg %p454_p4 }
  0x1c   : > { %p460_p9 = pnand %p459_p10, %p455_p7 }
  0x1e   : > { %463 = shalt.err (!%p460_p9)
}
  0x1f   : > { %402 = dma.hbm_to_vmem [thread:$0]  (!%p634_p13), %s149_s5, 256, %s151_s7, %s138_s9  }
  0x20   : > { %p156_p2 = pnand %p381_p0, %p155_p1 }
  0x21   : > { %s655_s26 = sand.u32 (!%p156_p2), 1, %s537_s13  }
  0x22   : > { %159 = sbr.rel (%p156_p2) target bundleno = 690 (0x2b2), region = 32  ;;  %s382_s28 = sshll.u32 (!%p156_p2), %s655_s26, 4 }
  0x23   : > { %s162_s29 = scalar_lea.sflag (!%p156_p2), [#allocation3], %s655_s26  ;;  %s165_s30 = scalar_lea.vmem (!%p156_p2), [#allocation2], %s382_s28 }
  0x27   : > { %524 = dma.done.wait (%p612_p6), %s162_s29, 256  }
  0x28   : > { %526 = vsyncadd (%p612_p6), %s162_s29, 4294967040  ;;  %v189_v0 = vld [vmem:[%s165_s30] sm:$0xff]  ;;  %v190_v1 = vld [vmem:[%s165_s30 + $0x8] sm:$0xff]  ;;  %vm198_vm0 = vcmask 7168   ;;  %vm202_vm1 = vcmask 64512   ;;  %s547_s23 = smov 127  }
  0x29   : > { %v194_v2 = vadd.f32 %v190_v1, %v189_v0  ;;  %v191_v3 = vmax.f32 %v189_v0, %v190_v1  ;;  %v200_v7 = vld [vmem:[%s707_s1] sm:$0x3]  ;;  %vm236_vm2 = vcmask 1041408   ;;  %vm232_vm3 = vcmask 15360   ;;  %s394_s8 = sshll.u32 %s590_s16, 4  ;;  %s188_s17 = scalar_lea.vmem [#allocation5], %s382_s28 }
  0x2a   : > { %v201_v13 = vld [vmem:[%s708_s2] sm:$0xff]  ;;  %v548_v14 = vmov 0   ;;  %s300_s11 = scalar_lea.hbm %s709_s3, %s394_s8  ;;  %s302_s19 = sshll.u32 %s188_s17, 4  ;;  %s303_s19 = int_to_ptr.vmem [resolvable:$true] %s302_s19 }
  0x2b   : > { %195 = vadd.xlane.f32.xlu0 %v194_v2  ;;  %443 = vset.pattern.permute.xlu1 %v548_v14  ;;  %s304_s20 = sshll.u32 %s300_s11, 4  ;;  %s289_s22 = scalar_lea.sflag [#allocation4], %s655_s26  ;;  %s305_s20 = int_to_ptr.hbm [resolvable:$true] %s304_s20 }
  0x2c   : > { %444 = vset.pattern.permute.xlu0 %v548_v14  ;;  %s493_s27 = sshra.s32 %s305_s20, 4  ;;  %s499_s28 = scalar_lea.hbm %s709_s3, 32  ;;  %s494_s27 = int_to_ptr.hbm [resolvable:$true] %s493_s27 }
  0x2d   : > { %s495_s16 = scalar_lea.hbm %s494_s27, 16  ;;  %p500_p0 = scmp.lt.s32.totalorder %s494_s27, %s709_s3 }
  0x2e   : > { %p496_p6 = scmp.ne.s32.totalorder %s494_s27, %s495_s16  ;;  %p501_p1 = scmp.lt.s32.totalorder %s499_s28, %s495_s16 }
  0x30   : > { %p497_p9 = pnand %p496_p6, %p619_p11  ;;  %p502_p3 = por %p501_p1, %p500_p0 }
  0x32   : > { %p498_p13 = pneg %p497_p9 }
  0x33   : > { %192 = vmax.xlane.f32.xlu0 %v191_v3 }
  0x34   : > { %p503_p4 = pnand %p502_p3, %p498_p13 }
  0x9e   : > { %v196_v4 = vpop.xlane.xlu0 %195 }
  0x9f   : > { %v197_v5 = vmul.f32 0.00390625, %v196_v4 }
  0xa6   : > { %v193_v6 = vpop.xlane.xlu0 %192 }
  0xa7   : > { %v199_v8 = vsel %vm198_vm0, %v193_v6, %v197_v5 }
  0xa8   : > { %221 = vmatpush.msra.mxu0 %v199_v8 }
  0xa9   : > { %384 = vmatmul.msk.f32.vlgmr.msra.gmra.mxu0 %vm202_vm1, %v200_v7 }
 0x126   : > { %v223_v9 = vpop.f32.mrf.mxu0 }
 0x127   : > { %v226_v10 = vmax.f32 %v223_v9, 0.0 }
 0x129   : > { %228 = vrot.lane.b32.xlu1 %v226_v10, %s547_s23 }
 0x19b   : > { %v229_v11 = vpop.permute.xlu1 %228 }
 0x19c   : > { %v231_v12 = vadd.f32 %v229_v11, %v226_v10 }
 0x19e   : > { %385 = vmatpush.msk.msra.mxu1 %vm236_vm2, %v231_v12 }
 0x19f   : > { %386 = vmatmul.msk.f32.vlgmr.msra.gmra.mxu1 %vm232_vm3, %v201_v13 }
 0x21c   : > { %v257_v15 = vpop.f32.mrf.mxu1 }
 0x21d   : > { %v387_v16 = vmul.f32 -1.442695, %v257_v15 }
 0x21f   : > { %445 = vpow2.f32 %v387_v16 }
 0x225   : > { %v446_v17 = vpop.eup %445 }
 0x226   : > { %v263_v18 = vadd.f32 1.0, %v446_v17 }
 0x228   : > { %447 = vrcp.f32 %v263_v18  ;;  %v275_v22 = vand.u32 2147483648, %v263_v18  ;;  %v273_v24 = vand.u32 2147483647, %v263_v18  ;;  %vm269_vm5 = vweird.f32 %v263_v18 }
 0x22a   : > { %v276_v26 = vor.u32 1.1754944e-38, %v275_v22  ;;  %vm274_vm7 = vcmp.eq.f32.partialorder %v273_v24, 8.507059e+37 }
 0x22e   : > { %v448_v19 = vpop.eup %447 }
 0x22f   : > { %v265_v20 = vmul.f32 %v448_v19, %v263_v18  ;;  %vm270_vm4 = vweird.f32 %v448_v19 }
 0x230   : > { %vm271_vm6 = vmor %vm269_vm5, %vm270_vm4 }
 0x231   : > { %v266_v21 = vsub.f32 1.0, %v265_v20 }
 0x233   : > { %v267_v23 = vmul.f32 %v448_v19, %v266_v21 }
 0x235   : > { %v268_v25 = vadd.f32 %v448_v19, %v267_v23 }
 0x237   : > { %v272_v27 = vsel %vm271_vm6, %v448_v19, %v268_v25 }
 0x238   : > { %v277_v28 = vsel %vm274_vm7, %v276_v26, %v272_v27 }
 0x239   : > { %281 = vperm.xlu1 %443, %v277_v28  }
 0x2ab   : > { %v282_v29 = vpop.permute.xlu1 %281 }
 0x2ac   : > { %v284_v30 = vmul.f32 %v282_v29, %v189_v0  ;;  %v285_v31 = vmul.f32 %v282_v29, %v190_v1 }
 0x2ae   : > { %286 = vst [vmem:[%s188_s17] sm:$0xff] %v284_v30 }
 0x2af   : > { %287 = vst [vmem:[%s188_s17 + $0x8] sm:$0xff] %v285_v31 }
 0x2b0   : > { %506 = shalt.err (!%p503_p4)
}
 0x2b1   : > { %397 = dma.vmem_to_hbm [thread:$0]  (%p619_p11), %s303_s19, 256, %s305_s20, %s289_s22  }
 0x2b2 PF: > { %s316_s26 = sand.u32 1, %s533_s12   ;;  %p715_p7 = scmp.ge.s32.totalorder %s545_s15, 2 }
 0x2b3   : > { %s317_s23 = scalar_lea.sflag [#allocation4], %s316_s26 }
 0x2b4   : > { %p404_p5 = pnand %p715_p7, %p623_p12 }
 0x2b6   : > { %p405_p8 = pneg %p404_p5 }
 0x2b8   : > { %528 = dma.done.wait (%p405_p8), %s317_s23, 256  }
 0x2b9   : > { %530 = vsyncadd (%p405_p8), %s317_s23, 4294967040  ;;  %p16_p10 = scmp.ge.s32.totalorder %s594_s18, 4   ;;  %s716_s12 = smov %s537_s13 }
 0x2ba   : > { %s717_s13 = smov %s541_s14  ;;  %s718_s14 = smov %s606_s21 }
 0x2bb   : > { %s719_s15 = smov %s594_s18  ;;  %18 = sbr.rel (!%p16_p10) target bundleno = 5 (0x5), region = 77 }
 0x2c0   :  { %323 = vsyncpa [#allocation3], 1 }
 0x2c1   :  { %325 = vsyncpa [#allocation3 + $0x1], 1 }
 0x2c2   :  { %326 = vsyncpa [#allocation4], 1 }
 0x2c3   :  { %328 = vsyncpa [#allocation4 + $0x1], 1 }

</bundles_post_ra>
